<compile_context>
chip_gen: v6e
topology: v6e:2x2x1
jax: 0.10.0
libtpu: 0.0.40
codegen_flags: <defaults>
</compile_context>

<pallas_src>
import functools
import math

import jax
import jax.numpy as jnp
from jax import lax
from jax.experimental import pallas as pl
from jax.experimental.pallas import tpu as pltpu

_LANE = 128                 # TPU lane width: keep matmul N/K dims lane-dense.
_SUBLANE = 8                # f32 sublane width: batch tiles must be multiples of 8.
_VPU_FIRST_LAYER_MAX_IN = 16  # in_dim <= this -> first layer on the VPU (no K padding).
_MID_UNROLL_MAX = 4         # unroll hidden->hidden layers up to this depth, fori beyond.


def _round_up(n, m):
    return ((n + m - 1) // m) * m


def _vmem_capacity_bytes():
    """Physical VMEM of the current chip (per TensorCore); conservative fallback."""
    try:
        return int(pltpu.get_tpu_info().vmem_capacity_bytes)
    except Exception:
        return 64 << 20  # v7x per-TC VMEM — the smallest of the supported generations.


# --------------------------------------------------------------------------- kernel


def _mlp_kernel(x_ref, *refs, num_mid, first_layer_on_vpu):
    """Fused MLP over one batch tile (everything stays in VMEM/vregs between layers).

    refs layout (all weights pre-transposed to (in, out), zero-padded, biases f32):
      num_mid > 0 : w_in, b_in, w_mid(L,Dh,Dh), b_mid(L,1,Dh), w_out, b_out, o_ref
      num_mid == 0: w_in, b_in, w_out, b_out, o_ref
    """
    if num_mid > 0:
        w_in_ref, b_in_ref, w_mid_ref, b_mid_ref, w_out_ref, b_out_ref, o_ref = refs
    else:
        w_in_ref, b_in_ref, w_out_ref, b_out_ref, o_ref = refs
        w_mid_ref = b_mid_ref = None

    mm_dtype = w_out_ref.dtype          # jnp.float32 or jnp.bfloat16 (MXU input dtype)
    x = x_ref[...].astype(jnp.float32)  # (TB, in_cols)

    # ----- layer 0: input -> hidden -----
    if first_layer_on_vpu:
        # Tiny in_dim: broadcast multiply-accumulate on the VPU. Avoids a K<8 MXU
        # matmul and lets the wrapper skip 128x feature padding of x in HBM.
        w0 = w_in_ref[...].astype(jnp.float32)            # (in_dim, D_h), small
        z = x[:, 0:1] * w0[0:1, :] + b_in_ref[...]
        for k in range(1, x.shape[1]):
            z = z + x[:, k:k + 1] * w0[k:k + 1, :]
    else:
        z = jnp.dot(x.astype(mm_dtype), w_in_ref[...],
                    preferred_element_type=jnp.float32) + b_in_ref[...]
    h = jax.nn.sigmoid(z)                                  # f32 on VPU/EUP

    # ----- hidden -> hidden layers (sigmoid after each) -----
    if num_mid > 0:
        def mid_layer(l, h):
            zl = jnp.dot(h.astype(mm_dtype), w_mid_ref[l],
                         preferred_element_type=jnp.float32) + b_mid_ref[l]
            return jax.nn.sigmoid(zl)

        if num_mid <= _MID_UNROLL_MAX:
            for l in range(num_mid):                       # static unroll, small depth
                h = mid_layer(l, h)
        else:
            h = lax.fori_loop(0, num_mid, mid_layer, h)    # bounds live ranges for deep MLPs

    # ----- final linear (regressor), no activation -----
    y = jnp.dot(h.astype(mm_dtype), w_out_ref[...],
                preferred_element_type=jnp.float32) + b_out_ref[...]
    o_ref[...] = y.astype(o_ref.dtype)


# --------------------------------------------------------------------------- params


def init_perceptron_params(key, input_dim=1, num_layers=1, hidden_dim=30, output_dim=1):
    """PyTorch nn.Linear default init: U(-1/sqrt(fan_in), +1/sqrt(fan_in)); W is (out, in)."""
    params = []
    prev = input_dim
    dims = [hidden_dim] * num_layers + [output_dim]
    for d in dims:
        key, kw, kb = jax.random.split(key, 3)
        bound = 1.0 / math.sqrt(prev)
        w = jax.random.uniform(kw, (d, prev), jnp.float32, -bound, bound)
        b = jax.random.uniform(kb, (d,), jnp.float32, -bound, bound)
        params.append((w, b))
        prev = d
    return params


def pack_params(params, matmul_dtype=jnp.float32):
    """Layout plumbing (one time): pre-transpose weights to (in, out), zero-pad each
    layer to its own lane-dense shape, keep biases in f32. Zero-padded weight ROWS
    (padded input features) keep the padded-lane 0.5s from leaking (see header)."""
    assert len(params) >= 2, "Perceptron needs num_layers >= 1 plus the regressor"
    in_dim = params[0][0].shape[1]
    hidden_dim = params[0][0].shape[0]
    out_dim = params[-1][0].shape[0]
    num_mid = len(params) - 2

    d_h = _round_up(hidden_dim, _LANE)
    d_out = _round_up(out_dim, _LANE)
    first_layer_on_vpu = in_dim <= _VPU_FIRST_LAYER_MAX_IN
    in_cols = in_dim if first_layer_on_vpu else _round_up(in_dim, _LANE)
    md = jnp.dtype(matmul_dtype)

    def pad_wT(w, rows, cols):
        o, i = w.shape
        wt = jnp.zeros((rows, cols), md)
        return wt.at[:i, :o].set(w.T.astype(md))

    def pad_b(b, cols):
        bb = jnp.zeros((1, cols), jnp.float32)
        return bb.at[0, :b.shape[0]].set(b.astype(jnp.float32))

    w0, b0 = params[0]
    ops = [pad_wT(w0, in_cols, d_h), pad_b(b0, d_h)]
    if num_mid > 0:
        ops.append(jnp.stack([pad_wT(w, d_h, d_h) for (w, _) in params[1:-1]]))
        ops.append(jnp.stack([pad_b(b, d_h) for (_, b) in params[1:-1]]))
    wl, bl = params[-1]
    ops += [pad_wT(wl, d_h, d_out), pad_b(bl, d_out)]

    meta = dict(
        input_dim=in_dim, in_cols=in_cols, first_layer_on_vpu=first_layer_on_vpu,
        d_hidden_pad=d_h, output_dim=out_dim, d_out_pad=d_out, num_mid=num_mid,
    )
    return tuple(ops), meta


# --------------------------------------------------------------------------- wrapper


def perceptron_forward(x, packed, *, tile_b=2048, interpret=False):
    """x: (B, input_dim) -> (B, output_dim). Matches Perceptron.forward."""
    ops, meta = packed
    num_mid = meta["num_mid"]
    in_dim, in_cols = meta["input_dim"], meta["in_cols"]
    out_dim, d_out = meta["output_dim"], meta["d_out_pad"]
    d_h = meta["d_hidden_pad"]
    first_on_vpu = meta["first_layer_on_vpu"]
    assert x.shape[1] == in_dim

    batch = x.shape[0]

    # ---- batch tile selection: balanced, sublane-aligned, >=2 tiles when possible ----
    b_ceil = _round_up(max(batch, 1), _SUBLANE)
    if b_ceil <= tile_b:
        # Split even a single-tile batch in two (when batch > 8) so the "parallel"
        # grid axis can shard across v7x's two TensorCores.
        tile_batch = _round_up(pl.cdiv(b_ceil, 2), _SUBLANE)
    else:
        n_tiles = pl.cdiv(b_ceil, tile_b)
        tile_batch = _round_up(pl.cdiv(b_ceil, n_tiles), _SUBLANE)  # minimal padding

    # ---- VMEM budget guard (weights resident with Buffered(1) => a single copy) ----
    weight_bytes = sum(int(o.size) * o.dtype.itemsize for o in ops)

    def act_bytes(tb):
        # double-buffered x/out tiles + intermediate activations / vreg-spill slack
        return 2 * tb * in_cols * 4 + 2 * tb * d_out * 4 + 4 * tb * d_h * 4

    budget = max(_vmem_capacity_bytes() - (4 << 20), 16 << 20)
    while tile_batch > _SUBLANE and weight_bytes + act_bytes(tile_batch) + (2 << 20) > budget:
        tile_batch = max(_SUBLANE, _round_up(tile_batch // 2, _SUBLANE))
    # TODO(synk): if weight_bytes alone exceeds `budget` (very wide/deep MLPs on v7x's
    # 64 MiB VMEM), stream weights per layer (grid over layers / K-tiling) instead of
    # keeping the whole stack resident.

    b_pad = _round_up(batch, tile_batch)
    grid = (b_pad // tile_batch,)

    # ---- input: pad batch rows (and features only on the MXU first-layer path) with
    #      ONE pad op; no (batch, 128) HBM round-trip when in_dim is tiny. ----
    x32 = x.astype(jnp.float32)
    pad_r, pad_c = b_pad - batch, in_cols - in_dim
    if pad_r or pad_c:
        x32 = jnp.pad(x32, ((0, pad_r), (0, pad_c)))

    vmem_limit = int(min(max(weight_bytes + act_bytes(tile_batch) + (8 << 20), 32 << 20),
                         budget))

    def resident(arr):
        # Whole array, constant block index, single-buffered: the block never changes
        # across the grid so double-buffering would only waste VMEM.
        zero = (0,) * arr.ndim
        try:
            return pl.BlockSpec(arr.shape, lambda i, _z=zero: _z,
                                pipeline_mode=pl.Buffered(1))
        except TypeError:  # older BlockSpec signature without pipeline_mode
            return pl.BlockSpec(arr.shape, lambda i, _z=zero: _z)

    kernel = functools.partial(_mlp_kernel, num_mid=num_mid,
                               first_layer_on_vpu=first_on_vpu)
    out = pl.pallas_call(
        kernel,
        out_shape=jax.ShapeDtypeStruct((b_pad, d_out), jnp.float32),
        grid=grid,
        in_specs=[pl.BlockSpec((tile_batch, in_cols), lambda i: (i, 0))]  # batch-tiled x
                 + [resident(o) for o in ops],                            # VMEM-resident weights
        out_specs=pl.BlockSpec((tile_batch, d_out), lambda i: (i, 0)),    # lane-dense output
        compiler_params=pltpu.CompilerParams(
            dimension_semantics=("parallel",),   # megacore-shards the batch loop on v7x
            vmem_limit_bytes=vmem_limit,
        ),
        interpret=interpret,
    )(x32, *ops)

    return out[:batch, :out_dim]


# --------------------------------------------------------------------------- reference


def perceptron_reference(x, params):
    h = x.astype(jnp.float32)
    for w, b in params[:-1]:
        h = jax.nn.sigmoid(h @ w.T + b[None, :])
    w, b = params[-1]
    return h @ w.T + b[None, :]


if __name__ == "__main__":
    key = jax.random.PRNGKey(0)

    # (name, batch, input_dim, num_layers, hidden_dim, output_dim, matmul_dtype, atol)
    # Tolerances are loose-ish because the MXU at default precision uses bf16 passes;
    # packing / padding bugs would produce O(0.1 - 1) errors and are still caught.
    configs = [
        ("defaults",     8,  1, 1, 30, 1, jnp.float32, 1e-2),   # module defaults
        ("deeper",      50,  3, 3, 32, 2, jnp.float32, 1e-2),   # unrolled mid layers, grid=2
        ("deeper_bf16", 50,  3, 3, 32, 2, jnp.bfloat16, 5e-2),  # bf16 MXU path
        ("mxu_in_fori", 40, 24, 6, 16, 3, jnp.float32, 1e-2),   # MXU first layer + fori mids
    ]

    for name, batch, in_d, n_layers, hid, out_d, md, atol in configs:
        key, kp, kx = jax.random.split(key, 3)
        params = init_perceptron_params(kp, input_dim=in_d, num_layers=n_layers,
                                        hidden_dim=hid, output_dim=out_d)
        packed = pack_params(params, matmul_dtype=md)
        x = jax.random.normal(kx, (batch, in_d), dtype=jnp.float32)

        fwd = jax.jit(functools.partial(perceptron_forward, packed=packed))
        out = fwd(x)
        jax.block_until_ready(out)

        ref = perceptron_reference(x, params)
        assert out.shape == (batch, out_d), (name, out.shape)
        err = float(jnp.max(jnp.abs(out - ref)))
        assert err < atol, (name, err)

    print("KERNEL_OK")
</pallas_src>

<mosaic_0001>
module attributes {stable_mosaic.version = 11 : i64} {
  func.func @_mlp_kernel(%arg0: i32, %arg1: memref<8x1xf32, #tpu.memory_space<vmem>>, %arg2: memref<1x128xf32, #tpu.memory_space<vmem>>, %arg3: memref<1x128xf32, #tpu.memory_space<vmem>>, %arg4: memref<128x128xf32, #tpu.memory_space<vmem>>, %arg5: memref<1x128xf32, #tpu.memory_space<vmem>>, %arg6: memref<8x128xf32, #tpu.memory_space<vmem>>) attributes {dimension_semantics = [#tpu.dimension_semantics<parallel>], iteration_bounds = array<i64: 1>, scalar_prefetch = 0 : i64, scratch_operands = 0 : i64, tpu.core_type = #tpu.core_type<tc>, window_params = [{transform_indices = @transform_0, window_bounds = array<i64: 8, 1>}, {pipeline_mode = #tpu.pipeline_mode<synchronous>, transform_indices = @transform_1, window_bounds = array<i64: 1, 128>}, {pipeline_mode = #tpu.pipeline_mode<synchronous>, transform_indices = @transform_2, window_bounds = array<i64: 1, 128>}, {pipeline_mode = #tpu.pipeline_mode<synchronous>, transform_indices = @transform_3, window_bounds = array<i64: 128, 128>}, {pipeline_mode = #tpu.pipeline_mode<synchronous>, transform_indices = @transform_4, window_bounds = array<i64: 1, 128>}, {transform_indices = @transform_5, window_bounds = array<i64: 8, 128>}]} {
    %c0 = arith.constant 0 : index
    %c0_0 = arith.constant 0 : index
    %0 = vector.load %arg1[%c0, %c0_0] : memref<8x1xf32, #tpu.memory_space<vmem>>, vector<8x1xf32>
    %c0_1 = arith.constant 0 : index
    %c0_2 = arith.constant 0 : index
    %1 = vector.load %arg2[%c0_1, %c0_2] : memref<1x128xf32, #tpu.memory_space<vmem>>, vector<1x128xf32>
    %2 = vector.broadcast %0 : vector<8x1xf32> to vector<8x128xf32>
    %3 = vector.broadcast %1 : vector<1x128xf32> to vector<8x128xf32>
    %4 = arith.mulf %2, %3 : vector<8x128xf32>
    %c0_3 = arith.constant 0 : index
    %c0_4 = arith.constant 0 : index
    %5 = vector.load %arg3[%c0_3, %c0_4] : memref<1x128xf32, #tpu.memory_space<vmem>>, vector<1x128xf32>
    %6 = vector.broadcast %5 : vector<1x128xf32> to vector<8x128xf32>
    %7 = arith.addf %4, %6 : vector<8x128xf32>
    %8 = arith.negf %7 : vector<8x128xf32>
    %9 = math.exp %8 : vector<8x128xf32>
    %cst = arith.constant 1.000000e+00 : f32
    %10 = vector.broadcast %cst : f32 to vector<8x128xf32>
    %11 = arith.addf %10, %9 : vector<8x128xf32>
    %12 = arith.divf %10, %11 : vector<8x128xf32>
    %c0_5 = arith.constant 0 : index
    %c0_6 = arith.constant 0 : index
    %13 = vector.load %arg4[%c0_5, %c0_6] : memref<128x128xf32, #tpu.memory_space<vmem>>, vector<128x128xf32>
    %cst_7 = arith.constant dense<0.000000e+00> : vector<8x128xf32>
    %14 = tpu.matmul %12, %13, %cst_7 {dimension_numbers = #tpu.dot_dimension_numbers<[1], [0], [0], [1], [0, 0, 1, 1], [], []>} : vector<8x128xf32>, vector<128x128xf32>, vector<8x128xf32> -> vector<8x128xf32>
    %c0_8 = arith.constant 0 : index
    %c0_9 = arith.constant 0 : index
    %15 = vector.load %arg5[%c0_8, %c0_9] : memref<1x128xf32, #tpu.memory_space<vmem>>, vector<1x128xf32>
    %16 = vector.broadcast %15 : vector<1x128xf32> to vector<8x128xf32>
    %17 = arith.addf %14, %16 : vector<8x128xf32>
    %c0_10 = arith.constant 0 : index
    %c0_11 = arith.constant 0 : index
    %18 = vector.load %arg6[%c0_10, %c0_11] : memref<8x128xf32, #tpu.memory_space<vmem>>, vector<8x128xf32>
    tpu.vector_store %arg6[%c0_10, %c0_11], %17 {strides = array<i32>} : memref<8x128xf32, #tpu.memory_space<vmem>>, vector<8x128xf32>,
    return
  }
  func.func @transform_0(%arg0: i32) -> (i32, i32) {
    %c0_i32 = arith.constant 0 : i32
    %c0_i32_0 = arith.constant 0 : i32
    return %arg0, %c0_i32 : i32, i32
  }
  func.func @transform_1(%arg0: i32) -> (i32, i32) {
    %c0_i32 = arith.constant 0 : i32
    %c0_i32_0 = arith.constant 0 : i32
    %c0_i32_1 = arith.constant 0 : i32
    return %c0_i32, %c0_i32_0 : i32, i32
  }
  func.func @transform_2(%arg0: i32) -> (i32, i32) {
    %c0_i32 = arith.constant 0 : i32
    %c0_i32_0 = arith.constant 0 : i32
    %c0_i32_1 = arith.constant 0 : i32
    return %c0_i32, %c0_i32_0 : i32, i32
  }
  func.func @transform_3(%arg0: i32) -> (i32, i32) {
    %c0_i32 = arith.constant 0 : i32
    %c0_i32_0 = arith.constant 0 : i32
    %c0_i32_1 = arith.constant 0 : i32
    return %c0_i32, %c0_i32_0 : i32, i32
  }
  func.func @transform_4(%arg0: i32) -> (i32, i32) {
    %c0_i32 = arith.constant 0 : i32
    %c0_i32_0 = arith.constant 0 : i32
    %c0_i32_1 = arith.constant 0 : i32
    return %c0_i32, %c0_i32_0 : i32, i32
  }
  func.func @transform_5(%arg0: i32) -> (i32, i32) {
    %c0_i32 = arith.constant 0 : i32
    %c0_i32_0 = arith.constant 0 : i32
    return %arg0, %c0_i32 : i32, i32
  }
}

</mosaic_0001>

<bundles_post_ra>
// kernel: perceptron_forward.1
= control target key start
LH: loop header
LB: loop body
LE: loop exit
PB: predicated region body
PF: predicated region fallthrough
CT: control target
= control target key end

     0   :  { %10 = vsyncpa [#allocation3], 0  ;;  %s250_s18 = smov [#allocation2]   ;;  %s304_s0 = inlined_call_operand.vmem [shape: f32[8,1], index: 0, kind: input, shape index: {}]   ;;  %s305_s1 = inlined_call_operand.vmem [shape: f32[1,128], index: 1, kind: input, shape index: {}]   ;;  %s306_s2 = inlined_call_operand.vmem [shape: f32[1,128], index: 2, kind: input, shape index: {}]   ;;  %s307_s3 = inlined_call_operand.hbm [shape: f32[128,128], index: 3, kind: input, shape index: {}]   ;;  %s308_s4 = inlined_call_operand.vmem [shape: f32[1,128], index: 4, kind: input, shape index: {}]   ;;  %s309_s5 = inlined_call_operand.vmem [shape: f32[8,128], index: 5, kind: output, shape index: {}]  }
   0x1   :  { %s22_s19 = sshll.u32 %s250_s18, 4  ;;  %s23_s19 = int_to_ptr.vmem [resolvable:$true] %s22_s19 }
   0x2   :  { %s236_s20 = scalar_lea.vmem %s23_s19, 2048  ;;  %p241_p1 = scmp.lt.s32.totalorder %s23_s19, %s23_s19 }
   0x3   :  { %p237_p0 = scmp.ne.s32.totalorder %s23_s19, %s236_s20  ;;  %p242_p2 = scmp.lt.s32.totalorder %s236_s20, %s236_s20 }
   0x5   :  { %p243_p3 = por %p242_p2, %p241_p1 }
   0x7   :  { %p244_p4 = pnand %p243_p3, %p237_p0 }
   0x9   :  { %247 = shalt.err (!%p244_p4)
}
   0xa   :  { %s251_s21 = smov 128   ;;  %s252_s22 = smov 8  }
   0xb   :  { %28 = dma.hbm_to_vmem [thread:$0]  %s307_s3, 2048, %s23_s19, [#allocation3], %s251_s21, %s251_s21, %s252_s22  }
   0xc   :  { %248 = dma.done.wait [#allocation3], 2048  }
   0xd   :  { %249 = vsyncadd [#allocation3], 4294965248  ;;  %v253_v0 = vmov 0   ;;  %v34_v1 = vld [vmem:[%s304_s0] sm:$0xff]  ;;  %v254_v2 = vmov 0.0   ;;  %v77_v3 = vld [vmem:[#allocation2 + $0x78] sm:$0xff] }
   0xe   :  { %223 = vset.pattern.permute.xlu0 %v253_v0  ;;  %182 = vmatprep.subr.mxu0 %v254_v2  ;;  %v76_v4 = vld [vmem:[#allocation2 + $0x70] sm:$0xff]  ;;  %v75_v5 = vld [vmem:[#allocation2 + $0x68] sm:$0xff]  ;;  %v74_v6 = vld [vmem:[#allocation2 + $0x60] sm:$0xff]  ;;  %vm255_vm0 = vmmov 0  }
   0xf   :  { %38 = vperm.xlu0 %223, %v34_v1   ;;  %183 = vmatpush3.msra.mxu0 %v77_v3  ;;  %v73_v7 = vld [vmem:[#allocation2 + $0x58] sm:$0xff]  ;;  %v72_v8 = vld [vmem:[#allocation2 + $0x50] sm:$0xff]  ;;  %v71_v9 = vld [vmem:[#allocation2 + $0x48] sm:$0xff] }
  0x10   :  { %184 = vmatprep.subr.mxu0 %v254_v2  ;;  %v70_v10 = vld [vmem:[#allocation2 + $0x40] sm:$0xff]  ;;  %v69_v11 = vld [vmem:[#allocation2 + $0x38] sm:$0xff]  ;;  %v68_v12 = vld [vmem:[#allocation2 + $0x30] sm:$0xff]  ;;  %214 = vmatprep.mubr.msk.f32.mxu0 %vm255_vm0, %v254_v2 }
  0x11   :  { %185 = vmatpush3.msra.mxu0 %v76_v4  ;;  %v67_v13 = vld [vmem:[#allocation2 + $0x28] sm:$0xff]  ;;  %v66_v14 = vld [vmem:[#allocation2 + $0x20] sm:$0xff]  ;;  %v65_v15 = vld [vmem:[#allocation2 + $0x18] sm:$0xff] }
  0x12   :  { %186 = vmatprep.subr.mxu0 %v254_v2  ;;  %v64_v16 = vld [vmem:[#allocation2 + $0x10] sm:$0xff]  ;;  %v63_v17 = vld [vmem:[#allocation2 + $0x8] sm:$0xff]  ;;  %v62_v18 = vld [vmem:[#allocation2] sm:$0xff] }
  0x13   :  { %187 = vmatpush3.msra.mxu0 %v75_v5  ;;  %v161_v19 = vld [vmem:[%s305_s1] ss:$0 sm:$0xff] }
  0x14   :  { %188 = vmatprep.subr.mxu0 %v254_v2  ;;  %v162_v20 = vld [vmem:[%s306_s2] ss:$0 sm:$0xff] }
  0x15   :  { %189 = vmatpush3.msra.mxu0 %v74_v6  ;;  %v164_v28 = vld [vmem:[%s308_s4] ss:$0 sm:$0xff] }
  0x16   :  { %190 = vmatprep.subr.mxu0 %v254_v2 }
  0x17   :  { %191 = vmatpush3.msra.mxu0 %v73_v7 }
  0x18   :  { %192 = vmatprep.subr.mxu0 %v254_v2 }
  0x19   :  { %193 = vmatpush3.msra.mxu0 %v72_v8 }
  0x1a   :  { %194 = vmatprep.subr.mxu0 %v254_v2 }
  0x1b   :  { %195 = vmatpush3.msra.mxu0 %v71_v9 }
  0x1c   :  { %196 = vmatprep.subr.mxu0 %v254_v2 }
  0x1d   :  { %197 = vmatpush3.msra.mxu0 %v70_v10 }
  0x1e   :  { %198 = vmatprep.subr.mxu0 %v254_v2 }
  0x1f   :  { %199 = vmatpush3.msra.mxu0 %v69_v11 }
  0x20   :  { %200 = vmatprep.subr.mxu0 %v254_v2 }
  0x21   :  { %201 = vmatpush3.msra.mxu0 %v68_v12 }
  0x22   :  { %202 = vmatprep.subr.mxu0 %v254_v2 }
  0x23   :  { %203 = vmatpush3.msra.mxu0 %v67_v13 }
  0x24   :  { %204 = vmatprep.subr.mxu0 %v254_v2 }
  0x25   :  { %205 = vmatpush3.msra.mxu0 %v66_v14 }
  0x26   :  { %206 = vmatprep.subr.mxu0 %v254_v2 }
  0x27   :  { %207 = vmatpush3.msra.mxu0 %v65_v15 }
  0x28   :  { %208 = vmatprep.subr.mxu0 %v254_v2 }
  0x29   :  { %209 = vmatpush3.msra.mxu0 %v64_v16 }
  0x2a   :  { %210 = vmatprep.subr.mxu0 %v254_v2 }
  0x2b   :  { %211 = vmatpush3.msra.mxu0 %v63_v17 }
  0x2c   :  { %212 = vmatprep.subr.mxu0 %v254_v2 }
  0x2d   :  { %213 = vmatpush3.msra.mxu0 %v62_v18 }
  0x8a   :  { %v39_v21 = vpop.permute.xlu0 %38 }
  0x8b   :  { %v47_v22 = vmul.f32 %v161_v19, %v39_v21 }
  0x8d   :  { %v55_v23 = vadd.f32 %v162_v20, %v47_v22 }
  0x8f   :  { %v163_v24 = vmul.f32 -1.442695, %v55_v23 }
  0x91   :  { %224 = vpow2.f32 %v163_v24 }
  0x9e   :  { %v225_v25 = vpop.eup %224 }
  0x9f   :  { %v59_v26 = vadd.f32 1.0, %v225_v25 }
  0xa1   :  { %226 = vrcp.f32 %v59_v26 }
  0xae   :  { %v227_v27 = vpop.eup %226 }
  0xaf   :  { %215 = vmatmul.mubr.f32.vlgmr.msra.gmra.mxu0 %v227_v27 }
 0x16f   :  { %v151_v29 = vpop.f32.mrf.mxu0 }
 0x170   :  { %v152_v30 = vadd.f32 %v164_v28, %v151_v29 }
 0x171   :  { %v216_v31 = vpop.f32.mrf.mxu0 }
 0x172   :  { %155 = vst [vmem:[%s309_s5] sm:$0xff] %v152_v30 }
 0x173   :  { %160 = vsyncpa [#allocation3], 1 }

</bundles_post_ra>
